<compile_context>
chip_gen: v7x
topology: tpu7x:2x2x1
jax: 0.10.0
libtpu: 0.0.40
codegen_flags: <defaults>
</compile_context>

<pallas_src>
import functools

import jax
import jax.numpy as jnp
from jax.experimental import pallas as pl
from jax.experimental.pallas import tpu as pltpu


def _resblock_kernel(x_ref, w1_ref, b1_ref, w2_ref, b2_ref, mask_ref, out_ref,
                     *, C, HW, shifts):
    """Fused ResBlock for one batch element, lane-dense (C, H*W) layout.

    x_ref    : (C, HW)        input slab (VMEM)
    w*_ref   : (K*K, C, C)    per-tap conv weights [tap, cout, cin], BN-folded
    b*_ref   : (C, 1)         BN-folded conv bias
    mask_ref : (K*K, 1, HW)   per-tap boundary masks (SAME zero padding)
    out_ref  : (C, HW)        output slab
    """
    x = x_ref[...]                                           # (C, HW) f32

    def conv(src, w_ref, b_ref):
        acc = jnp.zeros((C, HW), jnp.float32)
        for t, s in enumerate(shifts):
            if s == 0:
                xs = src                                     # center tap, mask == 1
            else:
                # shifted[p] = src[p + s]; out-of-image taps are masked to 0.
                xs = pltpu.roll(src, (-s) % HW, axis=1) * mask_ref[t]
            # Contract over cin in one matmul per tap (MXU, f32 accumulate).
            acc = acc + jnp.dot(w_ref[t], xs,
                                preferred_element_type=jnp.float32)
        return acc + b_ref[...]                              # (C, 1) broadcast

    y = jnp.maximum(conv(x, w1_ref, b1_ref), 0.0)            # conv1 + BN1 + ReLU
    y = conv(y, w2_ref, b2_ref)                              # conv2 + BN2
    out_ref[...] = y + x                                     # residual add (aligned)


def resblock_forward(x_nchw, params):
    """x_nchw: (N, C, H, W) float32 -> (N, C, H, W) float32."""
    N, C, H, W = x_nchw.shape
    K = params["w1"].shape[0]
    pad = K // 2
    HW = H * W
    KK = K * K
    eps = params["eps"]

    # Keep NCHW; flatten spatial onto lanes.  Free reshape: no pad/transpose,
    # no extra HBM pass over x.
    x = x_nchw.reshape(N, C, HW).astype(jnp.float32)

    # Fold eval-mode BN into the conv weights/bias (per output channel).
    def fold(w_hwio, b, gamma, beta, mean, var):
        scale = gamma / jnp.sqrt(var + eps)                  # (C,)
        shift = beta - mean * scale                          # (C,)
        # (K, K, Cin, Cout) -> (K*K, Cout, Cin), scaled on Cout.
        w = jnp.transpose(w_hwio, (0, 1, 3, 2)).reshape(KK, C, C)
        w = w * scale[None, :, None]
        bb = (b * scale + shift).reshape(C, 1)
        return w.astype(jnp.float32), bb.astype(jnp.float32)

    w1, b1 = fold(params["w1"], params["b1"], params["bn1_gamma"],
                  params["bn1_beta"], params["bn1_mean"], params["bn1_var"])
    w2, b2 = fold(params["w2"], params["b2"], params["bn2_gamma"],
                  params["bn2_beta"], params["bn2_mean"], params["bn2_var"])

    # Per-tap flat-lane shifts and boundary masks (implement SAME zero pad).
    offs = [(dh, dw) for dh in range(-pad, pad + 1) for dw in range(-pad, pad + 1)]
    shifts = tuple(dh * W + dw for dh, dw in offs)
    hh = jnp.arange(HW, dtype=jnp.int32) // W
    ww = jnp.arange(HW, dtype=jnp.int32) % W
    masks = jnp.stack([
        ((hh + dh >= 0) & (hh + dh < H) & (ww + dw >= 0) & (ww + dw < W))
        for dh, dw in offs
    ]).astype(jnp.float32).reshape(KK, 1, HW)

    kernel = functools.partial(_resblock_kernel, C=C, HW=HW, shifts=shifts)

    out = pl.pallas_call(
        kernel,
        out_shape=jax.ShapeDtypeStruct((N, C, HW), jnp.float32),
        grid_spec=pltpu.PrefetchScalarGridSpec(
            num_scalar_prefetch=0,
            grid=(N,),                                       # one image / step
            in_specs=[
                pl.BlockSpec((None, C, HW), lambda n: (n, 0, 0)),   # x slab
                pl.BlockSpec((KK, C, C), lambda n: (0, 0, 0)),      # w1 (folded)
                pl.BlockSpec((C, 1), lambda n: (0, 0)),             # b1 (folded)
                pl.BlockSpec((KK, C, C), lambda n: (0, 0, 0)),      # w2 (folded)
                pl.BlockSpec((C, 1), lambda n: (0, 0)),             # b2 (folded)
                pl.BlockSpec((KK, 1, HW), lambda n: (0, 0, 0)),     # tap masks
            ],
            out_specs=pl.BlockSpec((None, C, HW), lambda n: (n, 0, 0)),
        ),
        compiler_params=pltpu.CompilerParams(
            dimension_semantics=("parallel",)),              # megacore-shardable
    )(x, w1, b1, w2, b2, masks)

    return out.reshape(N, C, H, W)


def resblock_reference(x_nchw, params):
    """Pure-JAX reference (same eval-mode BN semantics)."""
    eps = params["eps"]
    x = jnp.transpose(x_nchw, (0, 2, 3, 1)).astype(jnp.float32)

    def conv2d(h, w_hwio, b):
        y = jax.lax.conv_general_dilated(
            h, w_hwio, window_strides=(1, 1), padding="SAME",
            dimension_numbers=("NHWC", "HWIO", "NHWC"))
        return y + b

    def bn(h, g, b, m, v):
        return (h - m) / jnp.sqrt(v + eps) * g + b

    y = conv2d(x, params["w1"], params["b1"])
    y = jnp.maximum(bn(y, params["bn1_gamma"], params["bn1_beta"],
                       params["bn1_mean"], params["bn1_var"]), 0.0)
    y = conv2d(y, params["w2"], params["b2"])
    y = bn(y, params["bn2_gamma"], params["bn2_beta"],
           params["bn2_mean"], params["bn2_var"])
    y = y + x
    return jnp.transpose(y, (0, 3, 1, 2))


def init_params(key, channels, kernel_size):
    k1, k2 = jax.random.split(key)
    C, K = channels, kernel_size
    # matches _conv init: weight ~ N(0, 0.02), bias = 0 ; BN defaults.
    return {
        "w1": 0.02 * jax.random.normal(k1, (K, K, C, C), jnp.float32),
        "b1": jnp.zeros((C,), jnp.float32),
        "w2": 0.02 * jax.random.normal(k2, (K, K, C, C), jnp.float32),
        "b2": jnp.zeros((C,), jnp.float32),
        "bn1_gamma": jnp.ones((C,), jnp.float32),
        "bn1_beta": jnp.zeros((C,), jnp.float32),
        "bn1_mean": jnp.zeros((C,), jnp.float32),
        "bn1_var": jnp.ones((C,), jnp.float32),
        "bn2_gamma": jnp.ones((C,), jnp.float32),
        "bn2_beta": jnp.zeros((C,), jnp.float32),
        "bn2_mean": jnp.zeros((C,), jnp.float32),
        "bn2_var": jnp.ones((C,), jnp.float32),
        "eps": 1e-5,
    }


if __name__ == "__main__":
    N, C, H, W, K = 2, 4, 16, 16, 3
    key = jax.random.PRNGKey(0)
    kx, kp, kb = jax.random.split(key, 3)

    x = jax.random.normal(kx, (N, C, H, W), jnp.float32)
    params = init_params(kp, C, K)

    # Perturb biases / BN stats so the folded-BN path is actually exercised
    # (PyTorch defaults are all identity and would not catch fold bugs).
    ks = jax.random.split(kb, 10)
    params.update({
        "b1": 0.1 * jax.random.normal(ks[0], (C,), jnp.float32),
        "b2": 0.1 * jax.random.normal(ks[1], (C,), jnp.float32),
        "bn1_gamma": 1.0 + 0.1 * jax.random.normal(ks[2], (C,), jnp.float32),
        "bn1_beta": 0.1 * jax.random.normal(ks[3], (C,), jnp.float32),
        "bn1_mean": 0.1 * jax.random.normal(ks[4], (C,), jnp.float32),
        "bn1_var": 0.5 + jax.random.uniform(ks[5], (C,), jnp.float32),
        "bn2_gamma": 1.0 + 0.1 * jax.random.normal(ks[6], (C,), jnp.float32),
        "bn2_beta": 0.1 * jax.random.normal(ks[7], (C,), jnp.float32),
        "bn2_mean": 0.1 * jax.random.normal(ks[8], (C,), jnp.float32),
        "bn2_var": 0.5 + jax.random.uniform(ks[9], (C,), jnp.float32),
    })

    out = resblock_forward(x, params)
    out = jax.block_until_ready(out)

    ref = resblock_reference(x, params)
    if out.shape != (N, C, H, W):
        raise RuntimeError(f"bad output shape {out.shape}")
    if not jnp.allclose(out, ref, atol=1e-4, rtol=1e-4):
        err = float(jnp.max(jnp.abs(out - ref)))
        raise RuntimeError(
            f"Pallas ResBlock output does not match reference (max err {err})")

    print("KERNEL_OK")
</pallas_src>

<mosaic_0001>
module attributes {stable_mosaic.version = 11 : i64} {
  func.func @_resblock_kernel(%arg0: i32, %arg1: memref<1x4x256xf32, #tpu.memory_space<vmem>>, %arg2: memref<9x4x4xf32, #tpu.memory_space<vmem>>, %arg3: memref<4x1xf32, #tpu.memory_space<vmem>>, %arg4: memref<9x4x4xf32, #tpu.memory_space<vmem>>, %arg5: memref<4x1xf32, #tpu.memory_space<vmem>>, %arg6: memref<9x1x256xf32, #tpu.memory_space<vmem>>, %arg7: memref<1x4x256xf32, #tpu.memory_space<vmem>>) attributes {dimension_semantics = [#tpu.dimension_semantics<parallel>], iteration_bounds = array<i64: 2>, scalar_prefetch = 0 : i64, scratch_operands = 0 : i64, tpu.core_type = #tpu.core_type<tc>, window_params = [{transform_indices = @transform_0, window_bounds = array<i64: 1, 4, 256>}, {pipeline_mode = #tpu.pipeline_mode<synchronous>, transform_indices = @transform_1, window_bounds = array<i64: 9, 4, 4>}, {pipeline_mode = #tpu.pipeline_mode<synchronous>, transform_indices = @transform_2, window_bounds = array<i64: 4, 1>}, {pipeline_mode = #tpu.pipeline_mode<synchronous>, transform_indices = @transform_3, window_bounds = array<i64: 9, 4, 4>}, {pipeline_mode = #tpu.pipeline_mode<synchronous>, transform_indices = @transform_4, window_bounds = array<i64: 4, 1>}, {pipeline_mode = #tpu.pipeline_mode<synchronous>, transform_indices = @transform_5, window_bounds = array<i64: 9, 1, 256>}, {transform_indices = @transform_6, window_bounds = array<i64: 1, 4, 256>}]} {
    %c0 = arith.constant 0 : index
    %c0_0 = arith.constant 0 : index
    %c0_1 = arith.constant 0 : index
    %0 = vector.load %arg1[%c0, %c0_0, %c0_1] : memref<1x4x256xf32, #tpu.memory_space<vmem>>, vector<1x4x256xf32>
    %1 = vector.shape_cast %0 : vector<1x4x256xf32> to vector<4x256xf32>
    %cst = arith.constant 0.000000e+00 : f32
    %2 = vector.broadcast %cst : f32 to vector<4x256xf32>
    %c17_i32 = arith.constant 17 : i32
    %3 = tpu.dynamic_rotate %1 by %c17_i32 dim 1 : vector<4x256xf32>, i32 -> vector<4x256xf32>
    %c0_2 = arith.constant 0 : index
    %c0_3 = arith.constant 0 : index
    %c0_4 = arith.constant 0 : index
    %4 = vector.load %arg6[%c0_2, %c0_3, %c0_4] : memref<9x1x256xf32, #tpu.memory_space<vmem>>, vector<1x1x256xf32>
    %5 = vector.shape_cast %4 : vector<1x1x256xf32> to vector<1x256xf32>
    %6 = vector.broadcast %5 : vector<1x256xf32> to vector<4x256xf32>
    %7 = arith.mulf %3, %6 : vector<4x256xf32>
    %c0_5 = arith.constant 0 : index
    %c0_6 = arith.constant 0 : index
    %c0_7 = arith.constant 0 : index
    %8 = vector.load %arg2[%c0_5, %c0_6, %c0_7] : memref<9x4x4xf32, #tpu.memory_space<vmem>>, vector<1x4x4xf32>
    %9 = vector.shape_cast %8 : vector<1x4x4xf32> to vector<4x4xf32>
    %cst_8 = arith.constant dense<0.000000e+00> : vector<4x256xf32>
    %10 = tpu.matmul %9, %7, %cst_8 {dimension_numbers = #tpu.dot_dimension_numbers<[1], [0], [0], [1], [0, 0, 1, 1], [], []>} : vector<4x4xf32>, vector<4x256xf32>, vector<4x256xf32> -> vector<4x256xf32>
    %11 = arith.addf %2, %10 : vector<4x256xf32>
    %c16_i32 = arith.constant 16 : i32
    %12 = tpu.dynamic_rotate %1 by %c16_i32 dim 1 : vector<4x256xf32>, i32 -> vector<4x256xf32>
    %c1 = arith.constant 1 : index
    %c0_9 = arith.constant 0 : index
    %c0_10 = arith.constant 0 : index
    %13 = vector.load %arg6[%c1, %c0_9, %c0_10] : memref<9x1x256xf32, #tpu.memory_space<vmem>>, vector<1x1x256xf32>
    %14 = vector.shape_cast %13 : vector<1x1x256xf32> to vector<1x256xf32>
    %15 = vector.broadcast %14 : vector<1x256xf32> to vector<4x256xf32>
    %16 = arith.mulf %12, %15 : vector<4x256xf32>
    %c1_11 = arith.constant 1 : index
    %c0_12 = arith.constant 0 : index
    %c0_13 = arith.constant 0 : index
    %17 = vector.load %arg2[%c1_11, %c0_12, %c0_13] : memref<9x4x4xf32, #tpu.memory_space<vmem>>, vector<1x4x4xf32>
    %18 = vector.shape_cast %17 : vector<1x4x4xf32> to vector<4x4xf32>
    %cst_14 = arith.constant dense<0.000000e+00> : vector<4x256xf32>
    %19 = tpu.matmul %18, %16, %cst_14 {dimension_numbers = #tpu.dot_dimension_numbers<[1], [0], [0], [1], [0, 0, 1, 1], [], []>} : vector<4x4xf32>, vector<4x256xf32>, vector<4x256xf32> -> vector<4x256xf32>
    %20 = arith.addf %11, %19 : vector<4x256xf32>
    %c15_i32 = arith.constant 15 : i32
    %21 = tpu.dynamic_rotate %1 by %c15_i32 dim 1 : vector<4x256xf32>, i32 -> vector<4x256xf32>
    %c2 = arith.constant 2 : index
    %c0_15 = arith.constant 0 : index
    %c0_16 = arith.constant 0 : index
    %22 = vector.load %arg6[%c2, %c0_15, %c0_16] : memref<9x1x256xf32, #tpu.memory_space<vmem>>, vector<1x1x256xf32>
    %23 = vector.shape_cast %22 : vector<1x1x256xf32> to vector<1x256xf32>
    %24 = vector.broadcast %23 : vector<1x256xf32> to vector<4x256xf32>
    %25 = arith.mulf %21, %24 : vector<4x256xf32>
    %c2_17 = arith.constant 2 : index
    %c0_18 = arith.constant 0 : index
    %c0_19 = arith.constant 0 : index
    %26 = vector.load %arg2[%c2_17, %c0_18, %c0_19] : memref<9x4x4xf32, #tpu.memory_space<vmem>>, vector<1x4x4xf32>
    %27 = vector.shape_cast %26 : vector<1x4x4xf32> to vector<4x4xf32>
    %cst_20 = arith.constant dense<0.000000e+00> : vector<4x256xf32>
    %28 = tpu.matmul %27, %25, %cst_20 {dimension_numbers = #tpu.dot_dimension_numbers<[1], [0], [0], [1], [0, 0, 1, 1], [], []>} : vector<4x4xf32>, vector<4x256xf32>, vector<4x256xf32> -> vector<4x256xf32>
    %29 = arith.addf %20, %28 : vector<4x256xf32>
    %c1_i32 = arith.constant 1 : i32
    %30 = tpu.dynamic_rotate %1 by %c1_i32 dim 1 : vector<4x256xf32>, i32 -> vector<4x256xf32>
    %c3 = arith.constant 3 : index
    %c0_21 = arith.constant 0 : index
    %c0_22 = arith.constant 0 : index
    %31 = vector.load %arg6[%c3, %c0_21, %c0_22] : memref<9x1x256xf32, #tpu.memory_space<vmem>>, vector<1x1x256xf32>
    %32 = vector.shape_cast %31 : vector<1x1x256xf32> to vector<1x256xf32>
    %33 = vector.broadcast %32 : vector<1x256xf32> to vector<4x256xf32>
    %34 = arith.mulf %30, %33 : vector<4x256xf32>
    %c3_23 = arith.constant 3 : index
    %c0_24 = arith.constant 0 : index
    %c0_25 = arith.constant 0 : index
    %35 = vector.load %arg2[%c3_23, %c0_24, %c0_25] : memref<9x4x4xf32, #tpu.memory_space<vmem>>, vector<1x4x4xf32>
    %36 = vector.shape_cast %35 : vector<1x4x4xf32> to vector<4x4xf32>
    %cst_26 = arith.constant dense<0.000000e+00> : vector<4x256xf32>
    %37 = tpu.matmul %36, %34, %cst_26 {dimension_numbers = #tpu.dot_dimension_numbers<[1], [0], [0], [1], [0, 0, 1, 1], [], []>} : vector<4x4xf32>, vector<4x256xf32>, vector<4x256xf32> -> vector<4x256xf32>
    %38 = arith.addf %29, %37 : vector<4x256xf32>
    %c4 = arith.constant 4 : index
    %c0_27 = arith.constant 0 : index
    %c0_28 = arith.constant 0 : index
    %39 = vector.load %arg2[%c4, %c0_27, %c0_28] : memref<9x4x4xf32, #tpu.memory_space<vmem>>, vector<1x4x4xf32>
    %40 = vector.shape_cast %39 : vector<1x4x4xf32> to vector<4x4xf32>
    %cst_29 = arith.constant dense<0.000000e+00> : vector<4x256xf32>
    %41 = tpu.matmul %40, %1, %cst_29 {dimension_numbers = #tpu.dot_dimension_numbers<[1], [0], [0], [1], [0, 0, 1, 1], [], []>} : vector<4x4xf32>, vector<4x256xf32>, vector<4x256xf32> -> vector<4x256xf32>
    %42 = arith.addf %38, %41 : vector<4x256xf32>
    %c255_i32 = arith.constant 255 : i32
    %43 = tpu.dynamic_rotate %1 by %c255_i32 dim 1 : vector<4x256xf32>, i32 -> vector<4x256xf32>
    %c5 = arith.constant 5 : index
    %c0_30 = arith.constant 0 : index
    %c0_31 = arith.constant 0 : index
    %44 = vector.load %arg6[%c5, %c0_30, %c0_31] : memref<9x1x256xf32, #tpu.memory_space<vmem>>, vector<1x1x256xf32>
    %45 = vector.shape_cast %44 : vector<1x1x256xf32> to vector<1x256xf32>
    %46 = vector.broadcast %45 : vector<1x256xf32> to vector<4x256xf32>
    %47 = arith.mulf %43, %46 : vector<4x256xf32>
    %c5_32 = arith.constant 5 : index
    %c0_33 = arith.constant 0 : index
    %c0_34 = arith.constant 0 : index
    %48 = vector.load %arg2[%c5_32, %c0_33, %c0_34] : memref<9x4x4xf32, #tpu.memory_space<vmem>>, vector<1x4x4xf32>
    %49 = vector.shape_cast %48 : vector<1x4x4xf32> to vector<4x4xf32>
    %cst_35 = arith.constant dense<0.000000e+00> : vector<4x256xf32>
    %50 = tpu.matmul %49, %47, %cst_35 {dimension_numbers = #tpu.dot_dimension_numbers<[1], [0], [0], [1], [0, 0, 1, 1], [], []>} : vector<4x4xf32>, vector<4x256xf32>, vector<4x256xf32> -> vector<4x256xf32>
    %51 = arith.addf %42, %50 : vector<4x256xf32>
    %c241_i32 = arith.constant 241 : i32
    %52 = tpu.dynamic_rotate %1 by %c241_i32 dim 1 : vector<4x256xf32>, i32 -> vector<4x256xf32>
    %c6 = arith.constant 6 : index
    %c0_36 = arith.constant 0 : index
    %c0_37 = arith.constant 0 : index
    %53 = vector.load %arg6[%c6, %c0_36, %c0_37] : memref<9x1x256xf32, #tpu.memory_space<vmem>>, vector<1x1x256xf32>
    %54 = vector.shape_cast %53 : vector<1x1x256xf32> to vector<1x256xf32>
    %55 = vector.broadcast %54 : vector<1x256xf32> to vector<4x256xf32>
    %56 = arith.mulf %52, %55 : vector<4x256xf32>
    %c6_38 = arith.constant 6 : index
    %c0_39 = arith.constant 0 : index
    %c0_40 = arith.constant 0 : index
    %57 = vector.load %arg2[%c6_38, %c0_39, %c0_40] : memref<9x4x4xf32, #tpu.memory_space<vmem>>, vector<1x4x4xf32>
    %58 = vector.shape_cast %57 : vector<1x4x4xf32> to vector<4x4xf32>
    %cst_41 = arith.constant dense<0.000000e+00> : vector<4x256xf32>
    %59 = tpu.matmul %58, %56, %cst_41 {dimension_numbers = #tpu.dot_dimension_numbers<[1], [0], [0], [1], [0, 0, 1, 1], [], []>} : vector<4x4xf32>, vector<4x256xf32>, vector<4x256xf32> -> vector<4x256xf32>
    %60 = arith.addf %51, %59 : vector<4x256xf32>
    %c240_i32 = arith.constant 240 : i32
    %61 = tpu.dynamic_rotate %1 by %c240_i32 dim 1 : vector<4x256xf32>, i32 -> vector<4x256xf32>
    %c7 = arith.constant 7 : index
    %c0_42 = arith.constant 0 : index
    %c0_43 = arith.constant 0 : index
    %62 = vector.load %arg6[%c7, %c0_42, %c0_43] : memref<9x1x256xf32, #tpu.memory_space<vmem>>, vector<1x1x256xf32>
    %63 = vector.shape_cast %62 : vector<1x1x256xf32> to vector<1x256xf32>
    %64 = vector.broadcast %63 : vector<1x256xf32> to vector<4x256xf32>
    %65 = arith.mulf %61, %64 : vector<4x256xf32>
    %c7_44 = arith.constant 7 : index
    %c0_45 = arith.constant 0 : index
    %c0_46 = arith.constant 0 : index
    %66 = vector.load %arg2[%c7_44, %c0_45, %c0_46] : memref<9x4x4xf32, #tpu.memory_space<vmem>>, vector<1x4x4xf32>
    %67 = vector.shape_cast %66 : vector<1x4x4xf32> to vector<4x4xf32>
    %cst_47 = arith.constant dense<0.000000e+00> : vector<4x256xf32>
    %68 = tpu.matmul %67, %65, %cst_47 {dimension_numbers = #tpu.dot_dimension_numbers<[1], [0], [0], [1], [0, 0, 1, 1], [], []>} : vector<4x4xf32>, vector<4x256xf32>, vector<4x256xf32> -> vector<4x256xf32>
    %69 = arith.addf %60, %68 : vector<4x256xf32>
    %c239_i32 = arith.constant 239 : i32
    %70 = tpu.dynamic_rotate %1 by %c239_i32 dim 1 : vector<4x256xf32>, i32 -> vector<4x256xf32>
    %c8 = arith.constant 8 : index
    %c0_48 = arith.constant 0 : index
    %c0_49 = arith.constant 0 : index
    %71 = vector.load %arg6[%c8, %c0_48, %c0_49] : memref<9x1x256xf32, #tpu.memory_space<vmem>>, vector<1x1x256xf32>
    %72 = vector.shape_cast %71 : vector<1x1x256xf32> to vector<1x256xf32>
    %73 = vector.broadcast %72 : vector<1x256xf32> to vector<4x256xf32>
    %74 = arith.mulf %70, %73 : vector<4x256xf32>
    %c8_50 = arith.constant 8 : index
    %c0_51 = arith.constant 0 : index
    %c0_52 = arith.constant 0 : index
    %75 = vector.load %arg2[%c8_50, %c0_51, %c0_52] : memref<9x4x4xf32, #tpu.memory_space<vmem>>, vector<1x4x4xf32>
    %76 = vector.shape_cast %75 : vector<1x4x4xf32> to vector<4x4xf32>
    %cst_53 = arith.constant dense<0.000000e+00> : vector<4x256xf32>
    %77 = tpu.matmul %76, %74, %cst_53 {dimension_numbers = #tpu.dot_dimension_numbers<[1], [0], [0], [1], [0, 0, 1, 1], [], []>} : vector<4x4xf32>, vector<4x256xf32>, vector<4x256xf32> -> vector<4x256xf32>
    %78 = arith.addf %69, %77 : vector<4x256xf32>
    %c0_54 = arith.constant 0 : index
    %c0_55 = arith.constant 0 : index
    %79 = vector.load %arg3[%c0_54, %c0_55] : memref<4x1xf32, #tpu.memory_space<vmem>>, vector<4x1xf32>
    %80 = vector.broadcast %79 : vector<4x1xf32> to vector<4x256xf32>
    %81 = arith.addf %78, %80 : vector<4x256xf32>
    %cst_56 = arith.constant 0.000000e+00 : f32
    %82 = vector.broadcast %cst_56 : f32 to vector<4x256xf32>
    %83 = arith.maximumf %81, %82 : vector<4x256xf32>
    %cst_57 = arith.constant 0.000000e+00 : f32
    %84 = vector.broadcast %cst_57 : f32 to vector<4x256xf32>
    %c17_i32_58 = arith.constant 17 : i32
    %85 = tpu.dynamic_rotate %83 by %c17_i32_58 dim 1 : vector<4x256xf32>, i32 -> vector<4x256xf32>
    %c0_59 = arith.constant 0 : index
    %c0_60 = arith.constant 0 : index
    %c0_61 = arith.constant 0 : index
    %86 = vector.load %arg6[%c0_59, %c0_60, %c0_61] : memref<9x1x256xf32, #tpu.memory_space<vmem>>, vector<1x1x256xf32>
    %87 = vector.shape_cast %86 : vector<1x1x256xf32> to vector<1x256xf32>
    %88 = vector.broadcast %87 : vector<1x256xf32> to vector<4x256xf32>
    %89 = arith.mulf %85, %88 : vector<4x256xf32>
    %c0_62 = arith.constant 0 : index
    %c0_63 = arith.constant 0 : index
    %c0_64 = arith.constant 0 : index
    %90 = vector.load %arg4[%c0_62, %c0_63, %c0_64] : memref<9x4x4xf32, #tpu.memory_space<vmem>>, vector<1x4x4xf32>
    %91 = vector.shape_cast %90 : vector<1x4x4xf32> to vector<4x4xf32>
    %cst_65 = arith.constant dense<0.000000e+00> : vector<4x256xf32>
    %92 = tpu.matmul %91, %89, %cst_65 {dimension_numbers = #tpu.dot_dimension_numbers<[1], [0], [0], [1], [0, 0, 1, 1], [], []>} : vector<4x4xf32>, vector<4x256xf32>, vector<4x256xf32> -> vector<4x256xf32>
    %93 = arith.addf %84, %92 : vector<4x256xf32>
    %c16_i32_66 = arith.constant 16 : i32
    %94 = tpu.dynamic_rotate %83 by %c16_i32_66 dim 1 : vector<4x256xf32>, i32 -> vector<4x256xf32>
    %c1_67 = arith.constant 1 : index
    %c0_68 = arith.constant 0 : index
    %c0_69 = arith.constant 0 : index
    %95 = vector.load %arg6[%c1_67, %c0_68, %c0_69] : memref<9x1x256xf32, #tpu.memory_space<vmem>>, vector<1x1x256xf32>
    %96 = vector.shape_cast %95 : vector<1x1x256xf32> to vector<1x256xf32>
    %97 = vector.broadcast %96 : vector<1x256xf32> to vector<4x256xf32>
    %98 = arith.mulf %94, %97 : vector<4x256xf32>
    %c1_70 = arith.constant 1 : index
    %c0_71 = arith.constant 0 : index
    %c0_72 = arith.constant 0 : index
    %99 = vector.load %arg4[%c1_70, %c0_71, %c0_72] : memref<9x4x4xf32, #tpu.memory_space<vmem>>, vector<1x4x4xf32>
    %100 = vector.shape_cast %99 : vector<1x4x4xf32> to vector<4x4xf32>
    %cst_73 = arith.constant dense<0.000000e+00> : vector<4x256xf32>
    %101 = tpu.matmul %100, %98, %cst_73 {dimension_numbers = #tpu.dot_dimension_numbers<[1], [0], [0], [1], [0, 0, 1, 1], [], []>} : vector<4x4xf32>, vector<4x256xf32>, vector<4x256xf32> -> vector<4x256xf32>
    %102 = arith.addf %93, %101 : vector<4x256xf32>
    %c15_i32_74 = arith.constant 15 : i32
    %103 = tpu.dynamic_rotate %83 by %c15_i32_74 dim 1 : vector<4x256xf32>, i32 -> vector<4x256xf32>
    %c2_75 = arith.constant 2 : index
    %c0_76 = arith.constant 0 : index
    %c0_77 = arith.constant 0 : index
    %104 = vector.load %arg6[%c2_75, %c0_76, %c0_77] : memref<9x1x256xf32, #tpu.memory_space<vmem>>, vector<1x1x256xf32>
    %105 = vector.shape_cast %104 : vector<1x1x256xf32> to vector<1x256xf32>
    %106 = vector.broadcast %105 : vector<1x256xf32> to vector<4x256xf32>
    %107 = arith.mulf %103, %106 : vector<4x256xf32>
    %c2_78 = arith.constant 2 : index
    %c0_79 = arith.constant 0 : index
    %c0_80 = arith.constant 0 : index
    %108 = vector.load %arg4[%c2_78, %c0_79, %c0_80] : memref<9x4x4xf32, #tpu.memory_space<vmem>>, vector<1x4x4xf32>
    %109 = vector.shape_cast %108 : vector<1x4x4xf32> to vector<4x4xf32>
    %cst_81 = arith.constant dense<0.000000e+00> : vector<4x256xf32>
    %110 = tpu.matmul %109, %107, %cst_81 {dimension_numbers = #tpu.dot_dimension_numbers<[1], [0], [0], [1], [0, 0, 1, 1], [], []>} : vector<4x4xf32>, vector<4x256xf32>, vector<4x256xf32> -> vector<4x256xf32>
    %111 = arith.addf %102, %110 : vector<4x256xf32>
    %c1_i32_82 = arith.constant 1 : i32
    %112 = tpu.dynamic_rotate %83 by %c1_i32_82 dim 1 : vector<4x256xf32>, i32 -> vector<4x256xf32>
    %c3_83 = arith.constant 3 : index
    %c0_84 = arith.constant 0 : index
    %c0_85 = arith.constant 0 : index
    %113 = vector.load %arg6[%c3_83, %c0_84, %c0_85] : memref<9x1x256xf32, #tpu.memory_space<vmem>>, vector<1x1x256xf32>
    %114 = vector.shape_cast %113 : vector<1x1x256xf32> to vector<1x256xf32>
    %115 = vector.broadcast %114 : vector<1x256xf32> to vector<4x256xf32>
    %116 = arith.mulf %112, %115 : vector<4x256xf32>
    %c3_86 = arith.constant 3 : index
    %c0_87 = arith.constant 0 : index
    %c0_88 = arith.constant 0 : index
    %117 = vector.load %arg4[%c3_86, %c0_87, %c0_88] : memref<9x4x4xf32, #tpu.memory_space<vmem>>, vector<1x4x4xf32>
    %118 = vector.shape_cast %117 : vector<1x4x4xf32> to vector<4x4xf32>
    %cst_89 = arith.constant dense<0.000000e+00> : vector<4x256xf32>
    %119 = tpu.matmul %118, %116, %cst_89 {dimension_numbers = #tpu.dot_dimension_numbers<[1], [0], [0], [1], [0, 0, 1, 1], [], []>} : vector<4x4xf32>, vector<4x256xf32>, vector<4x256xf32> -> vector<4x256xf32>
    %120 = arith.addf %111, %119 : vector<4x256xf32>
    %c4_90 = arith.constant 4 : index
    %c0_91 = arith.constant 0 : index
    %c0_92 = arith.constant 0 : index
    %121 = vector.load %arg4[%c4_90, %c0_91, %c0_92] : memref<9x4x4xf32, #tpu.memory_space<vmem>>, vector<1x4x4xf32>
    %122 = vector.shape_cast %121 : vector<1x4x4xf32> to vector<4x4xf32>
    %cst_93 = arith.constant dense<0.000000e+00> : vector<4x256xf32>
    %123 = tpu.matmul %122, %83, %cst_93 {dimension_numbers = #tpu.dot_dimension_numbers<[1], [0], [0], [1], [0, 0, 1, 1], [], []>} : vector<4x4xf32>, vector<4x256xf32>, vector<4x256xf32> -> vector<4x256xf32>
    %124 = arith.addf %120, %123 : vector<4x256xf32>
    %c255_i32_94 = arith.constant 255 : i32
    %125 = tpu.dynamic_rotate %83 by %c255_i32_94 dim 1 : vector<4x256xf32>, i32 -> vector<4x256xf32>
    %c5_95 = arith.constant 5 : index
    %c0_96 = arith.constant 0 : index
    %c0_97 = arith.constant 0 : index
    %126 = vector.load %arg6[%c5_95, %c0_96, %c0_97] : memref<9x1x256xf32, #tpu.memory_space<vmem>>, vector<1x1x256xf32>
    %127 = vector.shape_cast %126 : vector<1x1x256xf32> to vector<1x256xf32>
    %128 = vector.broadcast %127 : vector<1x256xf32> to vector<4x256xf32>
    %129 = arith.mulf %125, %128 : vector<4x256xf32>
    %c5_98 = arith.constant 5 : index
    %c0_99 = arith.constant 0 : index
    %c0_100 = arith.constant 0 : index
    %130 = vector.load %arg4[%c5_98, %c0_99, %c0_100] : memref<9x4x4xf32, #tpu.memory_space<vmem>>, vector<1x4x4xf32>
    %131 = vector.shape_cast %130 : vector<1x4x4xf32> to vector<4x4xf32>
    %cst_101 = arith.constant dense<0.000000e+00> : vector<4x256xf32>
    %132 = tpu.matmul %131, %129, %cst_101 {dimension_numbers = #tpu.dot_dimension_numbers<[1], [0], [0], [1], [0, 0, 1, 1], [], []>} : vector<4x4xf32>, vector<4x256xf32>, vector<4x256xf32> -> vector<4x256xf32>
    %133 = arith.addf %124, %132 : vector<4x256xf32>
    %c241_i32_102 = arith.constant 241 : i32
    %134 = tpu.dynamic_rotate %83 by %c241_i32_102 dim 1 : vector<4x256xf32>, i32 -> vector<4x256xf32>
    %c6_103 = arith.constant 6 : index
    %c0_104 = arith.constant 0 : index
    %c0_105 = arith.constant 0 : index
    %135 = vector.load %arg6[%c6_103, %c0_104, %c0_105] : memref<9x1x256xf32, #tpu.memory_space<vmem>>, vector<1x1x256xf32>
    %136 = vector.shape_cast %135 : vector<1x1x256xf32> to vector<1x256xf32>
    %137 = vector.broadcast %136 : vector<1x256xf32> to vector<4x256xf32>
    %138 = arith.mulf %134, %137 : vector<4x256xf32>
    %c6_106 = arith.constant 6 : index
    %c0_107 = arith.constant 0 : index
    %c0_108 = arith.constant 0 : index
    %139 = vector.load %arg4[%c6_106, %c0_107, %c0_108] : memref<9x4x4xf32, #tpu.memory_space<vmem>>, vector<1x4x4xf32>
    %140 = vector.shape_cast %139 : vector<1x4x4xf32> to vector<4x4xf32>
    %cst_109 = arith.constant dense<0.000000e+00> : vector<4x256xf32>
    %141 = tpu.matmul %140, %138, %cst_109 {dimension_numbers = #tpu.dot_dimension_numbers<[1], [0], [0], [1], [0, 0, 1, 1], [], []>} : vector<4x4xf32>, vector<4x256xf32>, vector<4x256xf32> -> vector<4x256xf32>
    %142 = arith.addf %133, %141 : vector<4x256xf32>
    %c240_i32_110 = arith.constant 240 : i32
    %143 = tpu.dynamic_rotate %83 by %c240_i32_110 dim 1 : vector<4x256xf32>, i32 -> vector<4x256xf32>
    %c7_111 = arith.constant 7 : index
    %c0_112 = arith.constant 0 : index
    %c0_113 = arith.constant 0 : index
    %144 = vector.load %arg6[%c7_111, %c0_112, %c0_113] : memref<9x1x256xf32, #tpu.memory_space<vmem>>, vector<1x1x256xf32>
    %145 = vector.shape_cast %144 : vector<1x1x256xf32> to vector<1x256xf32>
    %146 = vector.broadcast %145 : vector<1x256xf32> to vector<4x256xf32>
    %147 = arith.mulf %143, %146 : vector<4x256xf32>
    %c7_114 = arith.constant 7 : index
    %c0_115 = arith.constant 0 : index
    %c0_116 = arith.constant 0 : index
    %148 = vector.load %arg4[%c7_114, %c0_115, %c0_116] : memref<9x4x4xf32, #tpu.memory_space<vmem>>, vector<1x4x4xf32>
    %149 = vector.shape_cast %148 : vector<1x4x4xf32> to vector<4x4xf32>
    %cst_117 = arith.constant dense<0.000000e+00> : vector<4x256xf32>
    %150 = tpu.matmul %149, %147, %cst_117 {dimension_numbers = #tpu.dot_dimension_numbers<[1], [0], [0], [1], [0, 0, 1, 1], [], []>} : vector<4x4xf32>, vector<4x256xf32>, vector<4x256xf32> -> vector<4x256xf32>
    %151 = arith.addf %142, %150 : vector<4x256xf32>
    %c239_i32_118 = arith.constant 239 : i32
    %152 = tpu.dynamic_rotate %83 by %c239_i32_118 dim 1 : vector<4x256xf32>, i32 -> vector<4x256xf32>
    %c8_119 = arith.constant 8 : index
    %c0_120 = arith.constant 0 : index
    %c0_121 = arith.constant 0 : index
    %153 = vector.load %arg6[%c8_119, %c0_120, %c0_121] : memref<9x1x256xf32, #tpu.memory_space<vmem>>, vector<1x1x256xf32>
    %154 = vector.shape_cast %153 : vector<1x1x256xf32> to vector<1x256xf32>
    %155 = vector.broadcast %154 : vector<1x256xf32> to vector<4x256xf32>
    %156 = arith.mulf %152, %155 : vector<4x256xf32>
    %c8_122 = arith.constant 8 : index
    %c0_123 = arith.constant 0 : index
    %c0_124 = arith.constant 0 : index
    %157 = vector.load %arg4[%c8_122, %c0_123, %c0_124] : memref<9x4x4xf32, #tpu.memory_space<vmem>>, vector<1x4x4xf32>
    %158 = vector.shape_cast %157 : vector<1x4x4xf32> to vector<4x4xf32>
    %cst_125 = arith.constant dense<0.000000e+00> : vector<4x256xf32>
    %159 = tpu.matmul %158, %156, %cst_125 {dimension_numbers = #tpu.dot_dimension_numbers<[1], [0], [0], [1], [0, 0, 1, 1], [], []>} : vector<4x4xf32>, vector<4x256xf32>, vector<4x256xf32> -> vector<4x256xf32>
    %160 = arith.addf %151, %159 : vector<4x256xf32>
    %c0_126 = arith.constant 0 : index
    %c0_127 = arith.constant 0 : index
    %161 = vector.load %arg5[%c0_126, %c0_127] : memref<4x1xf32, #tpu.memory_space<vmem>>, vector<4x1xf32>
    %162 = vector.broadcast %161 : vector<4x1xf32> to vector<4x256xf32>
    %163 = arith.addf %160, %162 : vector<4x256xf32>
    %164 = arith.addf %163, %1 : vector<4x256xf32>
    %c0_128 = arith.constant 0 : index
    %c0_129 = arith.constant 0 : index
    %c0_130 = arith.constant 0 : index
    %165 = vector.load %arg7[%c0_128, %c0_129, %c0_130] : memref<1x4x256xf32, #tpu.memory_space<vmem>>, vector<1x4x256xf32>
    %166 = vector.shape_cast %165 : vector<1x4x256xf32> to vector<4x256xf32>
    %167 = vector.shape_cast %164 : vector<4x256xf32> to vector<1x4x256xf32>
    tpu.vector_store %arg7[%c0_128, %c0_129, %c0_130], %167 {strides = array<i32>} : memref<1x4x256xf32, #tpu.memory_space<vmem>>, vector<1x4x256xf32>,
    return
  }
  func.func @transform_0(%arg0: i32) -> (i32, i32, i32) {
    %c0_i32 = arith.constant 0 : i32
    %c0_i32_0 = arith.constant 0 : i32
    %c0_i32_1 = arith.constant 0 : i32
    return %arg0, %c0_i32, %c0_i32_0 : i32, i32, i32
  }
  func.func @transform_1(%arg0: i32) -> (i32, i32, i32) {
    %c0_i32 = arith.constant 0 : i32
    %c0_i32_0 = arith.constant 0 : i32
    %c0_i32_1 = arith.constant 0 : i32
    %c0_i32_2 = arith.constant 0 : i32
    return %c0_i32, %c0_i32_0, %c0_i32_1 : i32, i32, i32
  }
  func.func @transform_2(%arg0: i32) -> (i32, i32) {
    %c0_i32 = arith.constant 0 : i32
    %c0_i32_0 = arith.constant 0 : i32
    %c0_i32_1 = arith.constant 0 : i32
    return %c0_i32, %c0_i32_0 : i32, i32
  }
  func.func @transform_3(%arg0: i32) -> (i32, i32, i32) {
    %c0_i32 = arith.constant 0 : i32
    %c0_i32_0 = arith.constant 0 : i32
    %c0_i32_1 = arith.constant 0 : i32
    %c0_i32_2 = arith.constant 0 : i32
    return %c0_i32, %c0_i32_0, %c0_i32_1 : i32, i32, i32
  }
  func.func @transform_4(%arg0: i32) -> (i32, i32) {
    %c0_i32 = arith.constant 0 : i32
    %c0_i32_0 = arith.constant 0 : i32
    %c0_i32_1 = arith.constant 0 : i32
    return %c0_i32, %c0_i32_0 : i32, i32
  }
  func.func @transform_5(%arg0: i32) -> (i32, i32, i32) {
    %c0_i32 = arith.constant 0 : i32
    %c0_i32_0 = arith.constant 0 : i32
    %c0_i32_1 = arith.constant 0 : i32
    %c0_i32_2 = arith.constant 0 : i32
    return %c0_i32, %c0_i32_0, %c0_i32_1 : i32, i32, i32
  }
  func.func @transform_6(%arg0: i32) -> (i32, i32, i32) {
    %c0_i32 = arith.constant 0 : i32
    %c0_i32_0 = arith.constant 0 : i32
    %c0_i32_1 = arith.constant 0 : i32
    return %arg0, %c0_i32, %c0_i32_0 : i32, i32, i32
  }
}

</mosaic_0001>

<bundles_post_ra>
// kernel: tpu_custom_call.1
= control target key start
LH: loop header
LB: loop body
LE: loop exit
PB: predicated region body
PF: predicated region fallthrough
CT: control target
= control target key end

     0   :  { %11 = vsyncpa [#allocation3], 0  ;;  %s2863_s0 = inlined_call_operand.vmem [shape: f32[2,4,256], index: 0, kind: input, shape index: {}]   ;;  %s2864_s1 = inlined_call_operand.vmem [shape: f32[9,4,4], index: 1, kind: input, shape index: {}]   ;;  %s2865_s2 = inlined_call_operand.vmem [shape: f32[4,1], index: 2, kind: input, shape index: {}]   ;;  %s2866_s3 = inlined_call_operand.vmem [shape: f32[9,4,4], index: 3, kind: input, shape index: {}]   ;;  %s2867_s4 = inlined_call_operand.vmem [shape: f32[4,1], index: 4, kind: input, shape index: {}]   ;;  %s2868_s5 = inlined_call_operand.vmem [shape: f32[9,1,256], index: 5, kind: input, shape index: {}]   ;;  %s2869_s6 = inlined_call_operand.hbm [shape: f32[2,4,256], index: 6, kind: output, shape index: {}]  }
   0x1   :  { %13 = vsyncpa [#allocation3 + $0x1], 0  ;;  %s2380_s21 = smov 0   ;;  %s2382_s22 = smov 0  }
   0x2   :  { %s2384_s23 = smov 0   ;;  %s2386_s24 = smov 0  }
   0x3 LB: > { %s2401_s25 = sadd.s32 4294967295, %s2332_s24   ;;  %s2096_s26 = sadd.s32 4294967294, %s2332_s24   ;;  %s2332_s24 = sphi %s2386_s24, %s2875_s24   ;;  %s2328_s23 = sphi %s2384_s23, %s2874_s23   ;;  %s2324_s22 = sphi %s2382_s22, %s2873_s22   ;;  %s2320_s21 = sphi %s2380_s21, %s2872_s21  }
   0x4   : > { %s2405_s27 = sadd.s32 1, %s2332_s24   ;;  %s157_s28 = sadd.s32 1, %s2328_s23 }
   0x5   : > { %s154_s29 = ssub.s32 %s2332_s24, %s2405_s27  ;;  %p167_p0 = scmp.ne.s32.totalorder %s2328_s23, %s2324_s22 }
   0x6   : > { %p155_p1 = scmp.eq.s32.totalorder %s154_s29, 0  ;;  %p168_p2 = scmp.eq.s32.totalorder %s2401_s25, 1 }
   0x7   : > { %p173_p3 = scmp.ne.s32.totalorder %s2324_s22, %s2320_s21  ;;  %p174_p4 = scmp.eq.s32.totalorder %s2096_s26, 1 }
   0x8   : > { %s2416_s30 = scalar_select %p155_p1, %s2328_s23, %s157_s28  }
   0x9   : > { %p2418_p5 = por %p168_p2, %p167_p0  ;;  %p2422_p6 = por %p174_p4, %p173_p3 }
   0xa   : > { %p2099_p7 = scmp.ge.s32.totalorder %s2332_s24, 1  ;;  %p215_p8 = scmp.lt.s32.totalorder %s2332_s24, 3 }
   0xc   : > { %p216_p9 = pnand %p2099_p7, %p215_p8 }
   0xd   : > { %p245_p10 = scmp.lt.s32.totalorder (!%p216_p9), %s2401_s25, 1  ;;  %v2334_v0 = vmov (!%p216_p9), 0.0   ;;  %s2335_s14 = smov (!%p216_p9), 17   ;;  %v1182_v3 = vld [vmem:[%s2865_s2] sm:$0xf] (!%p216_p9)  ;;  %v2343_v4 = vmov (!%p216_p9), 0   ;;  %v258_v5 = vlaneseq (!%p216_p9) }
   0xe   : > { %219 = sbr.rel (%p216_p9) target bundleno = 851 (0x353), region = 44  ;;  %377 = vmatprep.mubr.f32.mxu0 (!%p216_p9), %v2334_v0  ;;  %1284 = vmatprep.mubr.f32.mxu1 (!%p216_p9), %v2334_v0  ;;  %s2336_s15 = smov (!%p216_p9), 16   ;;  %v263_v10 = vld [vmem:[%s2868_s5] sm:$0x3] (!%p216_p9)  ;;  %v2103_v11 = vld [vmem:[%s2868_s5 + $0x2] sm:$0x3] (!%p216_p9) }
   0xf   : > { %s2337_s16 = smov (!%p216_p9), 15   ;;  %s2338_s17 = smov (!%p216_p9), 1   ;;  %2268 = vset.pattern.permute.xlu0 (!%p216_p9), %v2343_v4  ;;  %v266_v6 = vshrl.u32 (!%p216_p9), %v258_v5, 7  ;;  %v2476_v7 = vand.u32 (!%p216_p9), 127, %v258_v5  ;;  %v2111_v18 = vld [vmem:[%s2868_s5 + $0x4] sm:$0x3] (!%p216_p9) }
  0x10   : > { %s2339_s18 = smov (!%p216_p9), 127   ;;  %s2340_s19 = smov (!%p216_p9), 113   ;;  %vm306_vm2 = vcmask (!%p216_p9), 1043456   ;;  %v2104_v30 = vld [vmem:[%s2864_s1 + $0x4] sm:$0xf] (!%p216_p9)  ;;  %vm302_vm4 = vcmask (!%p216_p9), 31744  }
  0x11   : > { %s2341_s20 = smov (!%p216_p9), 112   ;;  %s2342_s26 = smov (!%p216_p9), 111   ;;  %v2478_v8 = vsub.s32 (!%p216_p9), 0, %v266_v6  ;;  %v2480_v9 = vsub.s32 (!%p216_p9), 1, %v266_v6  ;;  %vm260_vm0 = vcmp.lt.s32.totalorder (!%p216_p9), %v2476_v7, 17  ;;  %vm282_vm1 = vcmp.lt.s32.totalorder (!%p216_p9), %v2476_v7, 16 }
  0x12   : > { %vm468_vm3 = vcmp.lt.s32.totalorder (!%p216_p9), %v2476_v7, 15  ;;  %v2116_v34 = vld [vmem:[%s2868_s5 + $0x6] sm:$0x3] (!%p216_p9)  ;;  %vm574_vm5 = vcmp.lt.s32.totalorder (!%p216_p9), %v2476_v7, 1  ;;  %v277_v43 = vld [vmem:[%s2864_s1] sm:$0xf] (!%p216_p9) }
  0x13   : > { %v2490_v14 = vrot.slane (!%p216_p9), %v263_v10, %v2480_v9  ;;  %v2494_v15 = vrot.slane (!%p216_p9), %v2103_v11, %v2478_v8  ;;  %v2497_v16 = vrot.slane (!%p216_p9), %v2103_v11, %v2480_v9  ;;  %v2500_v17 = vrot.slane (!%p216_p9), %v263_v10, %v2478_v8  ;;  %v2112_v48 = vld [vmem:[%s2864_s1 + $0x8] sm:$0xf] (!%p216_p9)  ;;  %v2117_v54 = vld [vmem:[%s2864_s1 + $0xc] sm:$0xf] (!%p216_p9) }
  0x14   : > { %v2518_v28 = vrot.slane (!%p216_p9), %v2111_v18, %v2480_v9  ;;  %v2537_v36 = vrot.slane (!%p216_p9), %v2111_v18, %v2478_v8  ;;  %v2544_v39 = vrot.slane (!%p216_p9), %v2116_v34, %v2480_v9  ;;  %v2556_v45 = vrot.slane (!%p216_p9), %v2116_v34, %v2478_v8  ;;  %v2125_v49 = vld [vmem:[%s2868_s5 + $0xa] sm:$0x3] (!%p216_p9)  ;;  %v2130_v56 = vld [vmem:[%s2868_s5 + $0xc] sm:$0x3] (!%p216_p9)  ;;  %v2135_v5 = vld [vmem:[%s2868_s5 + $0xe] sm:$0x3] (!%p216_p9) }
  0x15   : > { %s246_s9 = scalar_select %p245_p10, %s2401_s25, 1  ;;  %vm762_vm6 = vcmp.lt.s32.totalorder %v2476_v7, 127  ;;  %v2576_v52 = vrot.slane %v2125_v49, %v2480_v9  ;;  %vm868_vm7 = vcmp.lt.s32.totalorder %v2476_v7, 113  ;;  %v2592_v59 = vrot.slane %v2125_v49, %v2478_v8 }
  0x16   : > { %v2599_v61 = vrot.slane %v2130_v56, %v2480_v9  ;;  %vm974_vm8 = vcmp.lt.s32.totalorder %v2476_v7, 112  ;;  %v2615_v11 = vrot.slane %v2130_v56, %v2478_v8  ;;  %vm1080_vm9 = vcmp.lt.s32.totalorder %v2476_v7, 111 }
  0x17   : > { %s2185_s10 = sshll.u32 %s246_s9, 3 }
  0x18   : > { %s249_s13 = scalar_lea.vmem %s2863_s0, %s2185_s10 }
  0x19   : > { %v2435_v1 = vld [vmem:[%s249_s13] sm:$0xff] }
  0x1a   : > { %254 = vrot.lane.b32.xlu1 %v2435_v1, %s2335_s14  ;;  %278 = vrot.lane.b32.xlu0 %v2435_v1, %s2336_s15  ;;  %v2443_v2 = vcombine.high %v2435_v1, %v2435_v1 }
  0x1e   : > { %256 = vrot.lane.b32.xlu1 %v2443_v2, %s2335_s14  ;;  %280 = vrot.lane.b32.xlu0 %v2443_v2, %s2336_s15 }
  0x22   : > { %466 = vrot.lane.b32.xlu1 %v2443_v2, %s2337_s16  ;;  %464 = vrot.lane.b32.xlu0 %v2435_v1, %s2337_s16 }
  0x26   : > { %572 = vrot.lane.b32.xlu1 %v2443_v2, %s2338_s17  ;;  %570 = vrot.lane.b32.xlu0 %v2435_v1, %s2338_s17 }
  0x2a   : > { %760 = vrot.lane.b32.xlu1 %v2443_v2, %s2339_s18  ;;  %758 = vrot.lane.b32.xlu0 %v2435_v1, %s2339_s18 }
  0x2e   : > { %866 = vrot.lane.b32.xlu1 %v2443_v2, %s2340_s19  ;;  %864 = vrot.lane.b32.xlu0 %v2435_v1, %s2340_s19 }
  0x32   : > { %972 = vrot.lane.b32.xlu1 %v2443_v2, %s2341_s20  ;;  %970 = vrot.lane.b32.xlu0 %v2435_v1, %s2341_s20 }
  0x36   : > { %1078 = vrot.lane.b32.xlu1 %v2443_v2, %s2342_s26  ;;  %1076 = vrot.lane.b32.xlu0 %v2435_v1, %s2342_s26 }
  0x3a   : > { %1185 = vperm.xlu0 %2268, %v1182_v3   ;;  %v2121_v3 = vld [vmem:[%s2864_s1 + $0x10] sm:$0xf] }
  0x8c   : > { %v255_v12 = vpop.permute.xlu1 %254  ;;  %v279_v13 = vpop.permute.xlu0 %278 }
  0x90   : > { %v257_v19 = vpop.permute.xlu1 %256  ;;  %v281_v20 = vpop.permute.xlu0 %280 }
  0x91   : > { %v261_v21 = vsel %vm260_vm0, %v255_v12, %v257_v19  ;;  %v262_v22 = vsel %vm260_vm0, %v257_v19, %v255_v12  ;;  %v283_v23 = vsel %vm282_vm1, %v279_v13, %v281_v20  ;;  %v284_v24 = vsel %vm282_vm1, %v281_v20, %v279_v13  ;;  %v2126_v20 = vld [vmem:[%s2864_s1 + $0x14] sm:$0xf] }
  0x92   : > { %v276_v25 = vmul.f32 %v2490_v14, %v261_v21  ;;  %v298_v26 = vmul.f32 %v2494_v15, %v284_v24  ;;  %v299_v27 = vmul.f32 %v2497_v16, %v283_v23  ;;  %v275_v29 = vmul.f32 %v2500_v17, %v262_v22  ;;  %v2140_v22 = vld [vmem:[%s2868_s5 + $0x10] sm:$0x3] }
  0x93   : > { %v2622_v13 = vrot.slane %v2135_v5, %v2480_v9 }
  0x94   : > { %2105 = vmatprep.subr.msk.mxu0 %vm306_vm2, %v299_v27  ;;  %v467_v31 = vpop.permute.xlu1 %466  ;;  %v465_v32 = vpop.permute.xlu0 %464  ;;  %v2645_v27 = vrot.slane %v2140_v22, %v2480_v9 }
  0x95   : > { %2106 = vmatpush1.msk.msra.mxu0 %vm306_vm2, %v298_v26  ;;  %v469_v33 = vsel %vm468_vm3, %v465_v32, %v467_v31  ;;  %v470_v37 = vsel %vm468_vm3, %v467_v31, %v465_v32  ;;  %v2131_v31 = vld [vmem:[%s2864_s1 + $0x18] sm:$0xf] }
  0x96   : > { %2107 = vmatmul.mubr.msk.f32.vlgmr.msra.gmra.mrb[0].mxu0 %vm302_vm4, %v2104_v30  ;;  %2108 = vmatprep.subr.msk.mxu0 %vm306_vm2, %v276_v25  ;;  %v485_v35 = vmul.f32 %v2518_v28, %v469_v33  ;;  %v484_v42 = vmul.f32 %v2537_v36, %v470_v37  ;;  %v2638_v25 = vrot.slane %v2135_v5, %v2478_v8 }
  0x97   : > { %2109 = vmatpush1.msk.msra.mxu0 %vm306_vm2, %v275_v29  ;;  %457 = vmatprep.mubr.f32.mxu0 %v2334_v0  ;;  %v2657_v33 = vrot.slane %v2140_v22, %v2478_v8  ;;  %v2141_v8 = vld [vmem:[%s2864_s1 + $0x20] sm:$0xf] }
  0x98   : > { %2113 = vmatprep.subr.msk.mxu0 %vm306_vm2, %v485_v35  ;;  %v573_v38 = vpop.permute.xlu1 %572  ;;  %v571_v40 = vpop.permute.xlu0 %570  ;;  %v2136_v35 = vld [vmem:[%s2864_s1 + $0x1c] sm:$0xf] }
  0x99   : > { %v575_v41 = vsel %vm574_vm5, %v571_v40, %v573_v38  ;;  %v576_v46 = vsel %vm574_vm5, %v573_v38, %v571_v40 }
  0x9a   : > { %v591_v44 = vmul.f32 %v2544_v39, %v575_v41  ;;  %v590_v47 = vmul.f32 %v2556_v45, %v576_v46  ;;  %v2007_v46 = vld [vmem:[%s2867_s4] sm:$0xf] }
  0x9c   : > { %v761_v50 = vpop.permute.xlu1 %760  ;;  %v759_v51 = vpop.permute.xlu0 %758 }
  0x9d   : > { %v764_v53 = vsel %vm762_vm6, %v761_v50, %v759_v51  ;;  %v763_v60 = vsel %vm762_vm6, %v759_v51, %v761_v50 }
  0x9e   : > { %2110 = vmatmul.mubr.msk.f32.vlgmr.msra.gmra.mrb[0].mxu0 %vm302_vm4, %v277_v43  ;;  %v779_v55 = vmul.f32 %v2576_v52, %v764_v53  ;;  %v778_v63 = vmul.f32 %v2592_v59, %v763_v60 }
  0x9f   : > { %2114 = vmatpush1.msk.msra.mxu0 %vm306_vm2, %v484_v42  ;;  %561 = vmatprep.mubr.f32.mxu0 %v2334_v0 }
  0xa0   : > { %2118 = vmatprep.subr.msk.mxu0 %vm306_vm2, %v591_v44  ;;  %v867_v57 = vpop.permute.xlu1 %866  ;;  %v865_v58 = vpop.permute.xlu0 %864 }
  0xa1   : > { %v870_v62 = vsel %vm868_vm7, %v867_v57, %v865_v58  ;;  %v869_v12 = vsel %vm868_vm7, %v865_v58, %v867_v57 }
  0xa2   : > { %v885_v4 = vmul.f32 %v2599_v61, %v870_v62  ;;  %v884_v19 = vmul.f32 %v2615_v11, %v869_v12 }
  0xa4   : > { %v973_v6 = vpop.permute.xlu1 %972  ;;  %v971_v10 = vpop.permute.xlu0 %970 }
  0xa5   : > { %v976_v18 = vsel %vm974_vm8, %v973_v6, %v971_v10  ;;  %v975_v26 = vsel %vm974_vm8, %v971_v10, %v973_v6 }
  0xa6   : > { %2115 = vmatmul.mubr.msk.f32.vlgmr.msra.gmra.mrb[0].mxu0 %vm302_vm4, %v2112_v48  ;;  %v991_v21 = vmul.f32 %v2622_v13, %v976_v18  ;;  %v990_v30 = vmul.f32 %v2638_v25, %v975_v26 }
  0xa7   : > { %2119 = vmatpush1.msk.msra.mxu0 %vm306_vm2, %v590_v47  ;;  %667 = vmatprep.mubr.f32.mxu0 %v2334_v0 }
  0xa8   : > { %2122 = vmatprep.subr.msk.mxu0 %vm306_vm2, %v2443_v2  ;;  %v1079_v23 = vpop.permute.xlu1 %1078  ;;  %v1077_v24 = vpop.permute.xlu0 %1076 }
  0xa9   : > { %v1082_v29 = vsel %vm1080_vm9, %v1079_v23, %v1077_v24  ;;  %v1081_v9 = vsel %vm1080_vm9, %v1077_v24, %v1079_v23 }
  0xaa   : > { %v1097_v32 = vmul.f32 %v2645_v27, %v1082_v29  ;;  %v1096_v34 = vmul.f32 %v2657_v33, %v1081_v9 }
  0xae   : > { %2120 = vmatmul.mubr.msk.f32.vlgmr.msra.gmra.mrb[0].mxu0 %vm302_vm4, %v2117_v54 }
  0xaf   : > { %2123 = vmatpush1.msk.msra.mxu0 %vm306_vm2, %v2435_v1  ;;  %749 = vmatprep.mubr.f32.mxu0 %v2334_v0 }
  0xb0   : > { %2127 = vmatprep.subr.msk.mxu0 %vm306_vm2, %v779_v55  ;;  %v2145_v55 = vld [vmem:[%s2866_s3 + $0x4] sm:$0xf] }
  0xb6   : > { %2124 = vmatmul.mubr.msk.f32.vlgmr.msra.gmra.mrb[0].mxu0 %vm302_vm4, %v2121_v3 }
  0xb7   : > { %2128 = vmatpush1.msk.msra.mxu0 %vm306_vm2, %v778_v63  ;;  %855 = vmatprep.mubr.f32.mxu0 %v2334_v0 }
  0xb8   : > { %2132 = vmatprep.subr.msk.mxu0 %vm306_vm2, %v885_v4 }
  0xb9   : > { %v1186_v37 = vpop.permute.xlu0 %1185 }
  0xbe   : > { %2129 = vmatmul.mubr.msk.f32.vlgmr.msra.gmra.mrb[0].mxu0 %vm302_vm4, %v2126_v20 }
  0xbf   : > { %2133 = vmatpush1.msk.msra.mxu0 %vm306_vm2, %v884_v19  ;;  %961 = vmatprep.mubr.f32.mxu0 %v2334_v0 }
  0xc0   : > { %2137 = vmatprep.subr.msk.mxu0 %vm306_vm2, %v991_v21  ;;  %v2156_v21 = vld [vmem:[%s2866_s3 + $0xc] sm:$0xf] }
  0xc6   : > { %2134 = vmatmul.mubr.msk.f32.vlgmr.msra.gmra.mrb[0].mxu0 %vm302_vm4, %v2131_v31 }
  0xc7   : > { %2138 = vmatpush1.msk.msra.mxu0 %vm306_vm2, %v990_v30  ;;  %1067 = vmatprep.mubr.f32.mxu0 %v2334_v0 }
  0xc8   : > { %2142 = vmatprep.subr.msk.mxu0 %vm306_vm2, %v1097_v32 }
  0xce   : > { %2139 = vmatmul.mubr.msk.f32.vlgmr.msra.gmra.mrb[0].mxu0 %vm302_vm4, %v2136_v35 }
  0xcf   : > { %2143 = vmatpush1.msk.msra.mxu0 %vm306_vm2, %v1096_v34  ;;  %1173 = vmatprep.mubr.f32.mxu0 %v2334_v0 }
  0xd6   : > { %2144 = vmatmul.mubr.msk.f32.vlgmr.msra.gmra.mrb[0].mxu0 %vm302_vm4, %v2141_v8 }
 0x1a9   : > { %v1175_v38 = vpop.f32.mrb[0].mxu0 }
 0x1aa   : > { %v1188_v40 = vadd.f32 %v1186_v37, %v1175_v38  ;;  %v1177_v41 = vpop.f32.mrb[1].mxu0 }
 0x1ab   : > { %v1189_v43 = vadd.f32 %v1186_v37, %v1177_v41 }
 0x1ac   : > { %v2674_v42 = vmax.f32 %v1188_v40, 0.0 }
 0x1ad   : > { %v1191_v44 = vmax.f32 %v1189_v43, 0.0  ;;  %v2172_v43 = vld [vmem:[%s2866_s3 + $0x1c] sm:$0xf] }
 0x1ae   : > { %1192 = vrot.lane.b32.xlu0 %v2674_v42, %s2335_s14  ;;  %1201 = vrot.lane.b32.xlu1 %v2674_v42, %s2336_s15 }
 0x1b2   : > { %1371 = vrot.lane.b32.xlu0 %v2674_v42, %s2337_s16  ;;  %1203 = vrot.lane.b32.xlu1 %v1191_v44, %s2336_s15 }
 0x1b6   : > { %1463 = vrot.lane.b32.xlu0 %v2674_v42, %s2338_s17  ;;  %1194 = vrot.lane.b32.xlu1 %v1191_v44, %s2335_s14 }
 0x1ba   : > { %1639 = vrot.lane.b32.xlu0 %v2674_v42, %s2339_s18  ;;  %1373 = vrot.lane.b32.xlu1 %v1191_v44, %s2337_s16 }
 0x1be   : > { %1731 = vrot.lane.b32.xlu0 %v2674_v42, %s2340_s19  ;;  %1465 = vrot.lane.b32.xlu1 %v1191_v44, %s2338_s17 }
 0x1c2   : > { %1823 = vrot.lane.b32.xlu0 %v2674_v42, %s2341_s20  ;;  %1641 = vrot.lane.b32.xlu1 %v1191_v44, %s2339_s18 }
 0x1c6   : > { %1915 = vrot.lane.b32.xlu0 %v2674_v42, %s2342_s26  ;;  %1733 = vrot.lane.b32.xlu1 %v1191_v44, %s2340_s19  ;;  %s242_s19 = sand.u32 1, %s2324_s22  }
 0x1c7   : > { %s2023_s13 = scalar_lea.sflag [#allocation3], %s242_s19 }
 0x1ca   : > { %2010 = vperm.xlu0 %2268, %v2007_v46   ;;  %1825 = vrot.lane.b32.xlu1 %v1191_v44, %s2341_s20  ;;  %s2100_s20 = sshll.u32 %s242_s19, 3 }
 0x1cb   : > { %s244_s29 = scalar_lea.vmem [#allocation2], %s2100_s20 }
 0x1cc   : > { %s2037_s9 = sshll.u32 %s244_s29, 4  ;;  %s2823_s9 = int_to_ptr.vmem [resolvable:$true] %s2037_s9 }
 0x1cd   : > { %s2270_s28 = scalar_lea.vmem %s2823_s9, 128 }
 0x1ce   : > { %1917 = vrot.lane.b32.xlu1 %v1191_v44, %s2342_s26  ;;  %s2186_s26 = sshll.u32 %s2401_s25, 7  ;;  %p2271_p11 = scmp.ne.s32.totalorder %s2823_s9, %s2270_s28 }
 0x1cf   : > { %s2821_s12 = scalar_lea.hbm %s2869_s6, %s2186_s26  ;;  %s2344_s25 = smov [#allocation2]  }
 0x1d0   : > { %p2272_p12 = pnand %p2271_p11, %p2418_p5  ;;  %s2274_s14 = sshll.u32 %s2344_s25, 4  ;;  %s2275_s14 = int_to_ptr.vmem [resolvable:$false] %s2274_s14 }
 0x1d1   : > { %s2276_s15 = scalar_lea.vmem %s2275_s14, 256  ;;  %p2277_p0 = scmp.lt.s32.totalorder %s2823_s9, %s2275_s14 }
 0x1d2   : > { %p2273_p13 = pneg %p2272_p12  ;;  %p2278_p1 = scmp.lt.s32.totalorder %s2276_s15, %s2270_s28 }
 0x1d4   : > { %p2279_p2 = por %p2278_p1, %p2277_p0 }
 0x1d6   : > { %p2280_p3 = pnand %p2279_p2, %p2273_p13 }
 0x220   : > { %v1202_v47 = vpop.permute.xlu1 %1201  ;;  %v1193_v48 = vpop.permute.xlu0 %1192 }
 0x224   : > { %v1204_v49 = vpop.permute.xlu1 %1203  ;;  %v1372_v60 = vpop.permute.xlu0 %1371 }
 0x225   : > { %v1205_v50 = vsel %vm282_vm1, %v1202_v47, %v1204_v49  ;;  %v1206_v51 = vsel %vm282_vm1, %v1204_v49, %v1202_v47 }
 0x226   : > { %v1207_v53 = vmul.f32 %v1206_v51, %v2494_v15  ;;  %v1208_v54 = vmul.f32 %v1205_v50, %v2497_v16 }
 0x228   : > { %2146 = vmatprep.subr.msk.mxu1 %vm306_vm2, %v1208_v54  ;;  %v1195_v56 = vpop.permute.xlu1 %1194 }
 0x229   : > { %v1196_v57 = vsel %vm260_vm0, %v1193_v48, %v1195_v56  ;;  %v1197_v58 = vsel %vm260_vm0, %v1195_v56, %v1193_v48  ;;  %2147 = vmatpush1.msk.msra.mxu1 %vm306_vm2, %v1207_v53 }
 0x22a   : > { %v1198_v15 = vmul.f32 %v1197_v58, %v2500_v17  ;;  %v1199_v16 = vmul.f32 %v1196_v57, %v2490_v14  ;;  %2148 = vmatmul.mubr.msk.f32.vlgmr.msra.gmra.mrb[0].mxu1 %vm302_vm4, %v2145_v55  ;;  %v1200_v14 = vld [vmem:[%s2866_s3] sm:$0xf]  ;;  %v1464_v17 = vpop.permute.xlu0 %1463 }
 0x22b   : > { %1364 = vmatprep.mubr.f32.mxu1 %v2334_v0 }
 0x22c   : > { %2149 = vmatprep.subr.msk.mxu1 %vm306_vm2, %v1199_v16  ;;  %v1374_v62 = vpop.permute.xlu1 %1373 }
 0x22d   : > { %v1375_v63 = vsel %vm468_vm3, %v1372_v60, %v1374_v62  ;;  %2150 = vmatpush1.msk.msra.mxu1 %vm306_vm2, %v1198_v15  ;;  %v1376_v3 = vsel %vm468_vm3, %v1374_v62, %v1372_v60 }
 0x22e   : > { %v1378_v4 = vmul.f32 %v1375_v63, %v2518_v28  ;;  %v1377_v6 = vmul.f32 %v1376_v3, %v2537_v36  ;;  %v2152_v36 = vld [vmem:[%s2866_s3 + $0x8] sm:$0xf]  ;;  %v1640_v19 = vpop.permute.xlu0 %1639 }
 0x230   : > { %2153 = vmatprep.subr.msk.mxu1 %vm306_vm2, %v1378_v4  ;;  %v1466_v5 = vpop.permute.xlu1 %1465 }
 0x231   : > { %v1467_v10 = vsel %vm574_vm5, %v1464_v17, %v1466_v5  ;;  %v1468_v28 = vsel %vm574_vm5, %v1466_v5, %v1464_v17 }
 0x232   : > { %v1470_v12 = vmul.f32 %v1467_v10, %v2544_v39  ;;  %2151 = vmatmul.mubr.msk.f32.vlgmr.msra.gmra.mrb[0].mxu1 %vm302_vm4, %v1200_v14  ;;  %v1469_v18 = vmul.f32 %v1468_v28, %v2556_v45  ;;  %v1732_v23 = vpop.permute.xlu0 %1731 }
 0x233   : > { %2154 = vmatpush1.msk.msra.mxu1 %vm306_vm2, %v1377_v6  ;;  %1454 = vmatprep.mubr.f32.mxu1 %v2334_v0 }
 0x234   : > { %2157 = vmatprep.subr.msk.mxu1 %vm306_vm2, %v1470_v12  ;;  %v1642_v39 = vpop.permute.xlu1 %1641 }
 0x235   : > { %v1644_v20 = vsel %vm762_vm6, %v1642_v39, %v1640_v19  ;;  %v1643_v24 = vsel %vm762_vm6, %v1640_v19, %v1642_v39 }
 0x236   : > { %v1646_v22 = vmul.f32 %v1644_v20, %v2576_v52  ;;  %v2160_v52 = vld [vmem:[%s2866_s3 + $0x10] sm:$0xf]  ;;  %v1645_v29 = vmul.f32 %v1643_v24, %v2592_v59  ;;  %v1824_v32 = vpop.permute.xlu0 %1823  ;;  %v2164_v59 = vld [vmem:[%s2866_s3 + $0x14] sm:$0xf] }
 0x238   : > { %v1734_v45 = vpop.permute.xlu1 %1733 }
 0x239   : > { %v1736_v26 = vsel %vm868_vm7, %v1734_v45, %v1732_v23  ;;  %v1735_v9 = vsel %vm868_vm7, %v1732_v23, %v1734_v45 }
 0x23a   : > { %2155 = vmatmul.mubr.msk.f32.vlgmr.msra.gmra.mrb[0].mxu1 %vm302_vm4, %v2152_v36  ;;  %v1738_v30 = vmul.f32 %v1736_v26, %v2599_v61  ;;  %v1737_v61 = vmul.f32 %v1735_v9, %v2615_v11  ;;  %v1916_v37 = vpop.permute.xlu0 %1915  ;;  %v2168_v11 = vld [vmem:[%s2866_s3 + $0x18] sm:$0xf] }
 0x23b   : > { %2158 = vmatpush1.msk.msra.mxu1 %vm306_vm2, %v1469_v18  ;;  %1546 = vmatprep.mubr.f32.mxu1 %v2334_v0 }
 0x23c   : > { %2161 = vmatprep.subr.msk.mxu1 %vm306_vm2, %v1191_v44  ;;  %v1826_v31 = vpop.permute.xlu1 %1825 }
 0x23d   : > { %v1828_v34 = vsel %vm974_vm8, %v1826_v31, %v1824_v32  ;;  %v1827_v38 = vsel %vm974_vm8, %v1824_v32, %v1826_v31 }
 0x23e   : > { %v1830_v35 = vmul.f32 %v1828_v34, %v2622_v13  ;;  %v1829_v13 = vmul.f32 %v1827_v38, %v2638_v25 }
 0x240   : > { %v1918_v8 = vpop.permute.xlu1 %1917 }
 0x241   : > { %v1920_v40 = vsel %vm1080_vm9, %v1918_v8, %v1916_v37 }
 0x242   : > { %2159 = vmatmul.mubr.msk.f32.vlgmr.msra.gmra.mrb[0].mxu1 %vm302_vm4, %v2156_v21  ;;  %v1922_v41 = vmul.f32 %v1920_v40, %v2645_v27  ;;  %v2176_v27 = vld [vmem:[%s2866_s3 + $0x20] sm:$0xf] }
 0x243   : > { %2162 = vmatpush1.msk.msra.mxu1 %vm306_vm2, %v2674_v42  ;;  %1630 = vmatprep.mubr.f32.mxu1 %v2334_v0  ;;  %v1919_v42 = vsel %vm1080_vm9, %v1916_v37, %v1918_v8 }
 0x244   : > { %2165 = vmatprep.subr.msk.mxu1 %vm306_vm2, %v1646_v22  ;;  %v1921_v25 = vmul.f32 %v1919_v42, %v2657_v33 }
 0x249   : > { %v2011_v7 = vpop.permute.xlu0 %2010 }
 0x24a   : > { %2163 = vmatmul.mubr.msk.f32.vlgmr.msra.gmra.mrb[0].mxu1 %vm302_vm4, %v2160_v52 }
 0x24b   : > { %2166 = vmatpush1.msk.msra.mxu1 %vm306_vm2, %v1645_v29  ;;  %1722 = vmatprep.mubr.f32.mxu1 %v2334_v0 }
 0x24c   : > { %2169 = vmatprep.subr.msk.mxu1 %vm306_vm2, %v1738_v30 }
 0x252   : > { %2167 = vmatmul.mubr.msk.f32.vlgmr.msra.gmra.mrb[0].mxu1 %vm302_vm4, %v2164_v59 }
 0x253   : > { %2170 = vmatpush1.msk.msra.mxu1 %vm306_vm2, %v1737_v61  ;;  %1814 = vmatprep.mubr.f32.mxu1 %v2334_v0 }
 0x254   : > { %2173 = vmatprep.subr.msk.mxu1 %vm306_vm2, %v1830_v35 }
 0x25a   : > { %2171 = vmatmul.mubr.msk.f32.vlgmr.msra.gmra.mrb[0].mxu1 %vm302_vm4, %v2168_v11 }
 0x25b   : > { %2174 = vmatpush1.msk.msra.mxu1 %vm306_vm2, %v1829_v13  ;;  %1906 = vmatprep.mubr.f32.mxu1 %v2334_v0 }
 0x25c   : > { %2177 = vmatprep.subr.msk.mxu1 %vm306_vm2, %v1922_v41 }
 0x262   : > { %2175 = vmatmul.mubr.msk.f32.vlgmr.msra.gmra.mrb[0].mxu1 %vm302_vm4, %v2172_v43 }
 0x263   : > { %2178 = vmatpush1.msk.msra.mxu1 %vm306_vm2, %v1921_v25  ;;  %1998 = vmatprep.mubr.f32.mxu1 %v2334_v0 }
 0x26a   : > { %2179 = vmatmul.mubr.msk.f32.vlgmr.msra.gmra.mrb[0].mxu1 %vm302_vm4, %v2176_v27 }
 0x33d   : > { %v2000_v44 = vpop.f32.mrb[0].mxu1 }
 0x33e   : > { %v2013_v46 = vadd.f32 %v2011_v7, %v2000_v44  ;;  %v2002_v47 = vpop.f32.mrb[1].mxu1 }
 0x33f   : > { %v2014_v33 = vadd.f32 %v2011_v7, %v2002_v47 }
 0x340   : > { %v2015_v48 = vadd.f32 %v2013_v46, %v2435_v1 }
 0x341   : > { %v2016_v0 = vadd.f32 %v2014_v33, %v2443_v2 }
 0x343   : > { %v2019_v49 = vcombine.low %v2015_v48, %v2016_v0 }
 0x345   : > { %2021 = vst [vmem:[%s244_s29] sm:$0xff] %v2019_v49 }
 0x346   : > { %2283 = shalt.err (!%p2280_p3)
}
 0x347   : > { %s2284_s16 = scalar_lea.hbm %s2821_s12, 128  ;;  %s2288_s19 = scalar_lea.hbm %s2869_s6, 256 }
 0x348   : > { %p2285_p4 = scmp.ne.s32.totalorder %s2821_s12, %s2284_s16  ;;  %p2289_p9 = scmp.lt.u32.totalorder %s2821_s12, %s2869_s6 }
 0x349   : > { %p2290_p10 = scmp.lt.u32.totalorder %s2288_s19, %s2284_s16  ;;  %p2292_p12 = scmp.lt.u32.totalorder %s2284_s16, %s2821_s12 }
 0x34a   : > { %p2286_p7 = pnand %p2285_p4, %p2418_p5 }
 0x34b   : > { %p2291_p11 = por %p2290_p10, %p2289_p9 }
 0x34c   : > { %p2287_p8 = pneg %p2286_p7 }
 0x34d   : > { %p2293_p13 = por %p2292_p12, %p2291_p11 }
 0x34f   : > { %p2294_p0 = pnand %p2293_p13, %p2287_p8 }
 0x351   : > { %2297 = shalt.err (!%p2294_p0)
}
 0x352   : > { %2219 = dma.vmem_to_hbm [thread:$0]  (%p2418_p5), %s2823_s9, 128, %s2821_s12, %s2023_s13  }
 0x353 PF: > { %p2225_p1 = scmp.ge.s32.totalorder %s2332_s24, 2  ;;  %s2049_s29 = sand.u32 1, %s2320_s21  }
 0x354   : > { %s2050_s10 = scalar_lea.sflag [#allocation3], %s2049_s29 }
 0x355   : > { %p2222_p2 = pnand %p2225_p1, %p2422_p6 }
 0x357   : > { %2315 = dma.done.wait (!%p2222_p2), %s2050_s10, 128  }
 0x358   : > { %2317 = vsyncadd (!%p2222_p2), %s2050_s10, 4294967168  ;;  %p16_p3 = scmp.ge.s32.totalorder %s2405_s27, 4   ;;  %s2872_s21 = smov %s2324_s22 }
 0x359   : > { %s2873_s22 = smov %s2328_s23  ;;  %s2874_s23 = smov %s2416_s30 }
 0x35a   : > { %s2875_s24 = smov %s2405_s27  ;;  %18 = sbr.rel (!%p16_p3) target bundleno = 3 (0x3), region = 102 }
 0x361   :  { %2055 = vsyncpa [#allocation3], 1 }
 0x362   :  { %2057 = vsyncpa [#allocation3 + $0x1], 1 }

</bundles_post_ra>
